<compile_context>
chip_gen: v5e
topology: v5e:2x2
jax: 0.10.0
libtpu: 0.0.40
codegen_flags: <defaults>
</compile_context>

<pallas_src>
import functools

import jax
import jax.numpy as jnp
from jax.experimental import pallas as pl
from jax.experimental.pallas import tpu as pltpu


def _round_up(x, m):
    return (x + m - 1) // m * m


def _pick_tile(dim, max_tile, quantum):
    """Largest multiple of `quantum` <= max_tile that divides `dim` (dim % quantum == 0)."""
    t = min(dim, max(quantum, (max_tile // quantum) * quantum))
    while dim % t != 0:
        t -= quantum
    return t


def _vmem_caps():
    """(per-step tile budget bytes, vmem_limit_bytes), derived from the chip."""
    cap = 0
    try:
        cap = int(getattr(pltpu.get_tpu_info(), "vmem_capacity_bytes", 0))
    except Exception:
        cap = 0
    if cap <= 0:
        cap = 64 << 20  # unknown chip / interpret mode -> assume v7x-sized VMEM (safe anywhere)
    tile_budget = max(min(cap // 2 - (4 << 20), 96 << 20), 8 << 20)
    vmem_limit = max(min(cap * 3 // 4, 100 << 20), 32 << 20)
    return tile_budget, vmem_limit


def _smd_direct_kernel(x_ref, w_ref, b_ref, o_ref, *, compute_dtype):
    # Single K step: no accumulator scratch, straight matmul + bias -> output.
    # x_ref: (1, tb, Kp)  w_ref: (1, Kp, tn)  b_ref: (1, 1, tn)  o_ref: (1, tb, tn)
    acc = jnp.dot(x_ref[0].astype(compute_dtype),
                  w_ref[0].astype(compute_dtype),
                  preferred_element_type=jnp.float32)
    o_ref[0] = (acc + b_ref[0].astype(jnp.float32)).astype(o_ref.dtype)


def _smd_acc_kernel(x_ref, w_ref, b_ref, o_ref, acc_ref, *, compute_dtype):
    # Multi K step: f32 VMEM accumulator, init/finalize gated by pl.when.
    # x_ref: (1, tb, tk)  w_ref: (1, tk, tn)  b_ref: (1, 1, tn)
    # o_ref: (1, tb, tn)  acc_ref: (tb, tn) f32
    k = pl.program_id(3)            # grid indices read at top level only
    nk = pl.num_programs(3)

    @pl.when(k == 0)
    def _init():
        acc_ref[...] = jnp.zeros_like(acc_ref)

    acc_ref[...] += jnp.dot(x_ref[0].astype(compute_dtype),
                            w_ref[0].astype(compute_dtype),
                            preferred_element_type=jnp.float32)

    @pl.when(k == nk - 1)
    def _finalize():
        o_ref[0] = (acc_ref[...] + b_ref[0].astype(jnp.float32)).astype(o_ref.dtype)


def sparse_multi_dense(x_stacked, weight, bias, *,
                       compute_dtype=jnp.bfloat16,
                       max_tb=256, max_tk=512, max_tn=512):
    """x_stacked: [T, B, K], weight: [T, K, N], bias: [T, N] -> [T, B, N]."""
    T, B, K = x_stacked.shape
    Tw, Kw, N = weight.shape
    assert (Tw, Kw) == (T, K) and bias.shape == (T, N)
    out_dtype = x_stacked.dtype

    Bp = _round_up(B, 8)
    Kp = _round_up(K, 128)
    Np = _round_up(N, 128)

    # Pad only when needed; keep native dtype (the bf16 cast happens in-kernel)
    # so the wrapper does not add an extra full HBM pass over the weights.
    x_p = x_stacked
    if (Bp, Kp) != (B, K):
        x_p = jnp.zeros((T, Bp, Kp), x_stacked.dtype).at[:, :B, :K].set(x_stacked)
    w_p = weight
    if (Kp, Np) != (K, N):
        w_p = jnp.zeros((T, Kp, Np), weight.dtype).at[:, :K, :N].set(weight)
    b_p = bias.reshape(T, 1, N)
    if Np != N:
        b_p = jnp.zeros((T, 1, Np), bias.dtype).at[:, :, :N].set(b_p)

    tile_budget, vmem_limit = _vmem_caps()
    x_item = jnp.dtype(x_p.dtype).itemsize
    w_item = jnp.dtype(w_p.dtype).itemsize
    o_item = jnp.dtype(out_dtype).itemsize
    b_item = jnp.dtype(b_p.dtype).itemsize

    tb = _pick_tile(Bp, max_tb, 8)
    tk = _pick_tile(Kp, max_tk, 128)
    tn = _pick_tile(Np, max_tn, 128)

    def vmem_cost(tb_, tk_, tn_):
        # Double-buffered input/output blocks + f32 accumulator (worst case).
        blks = (tb_ * tk_ * x_item + tk_ * tn_ * w_item
                + tb_ * tn_ * o_item + tn_ * b_item)
        return 2 * blks + tb_ * tn_ * 4

    # Shrink tk first (keeps lane-dense tn wide for long contiguous weight reads),
    # then tn, then tb, until everything fits the per-generation VMEM budget.
    while vmem_cost(tb, tk, tn) > tile_budget and tk > 128:
        tk = _pick_tile(Kp, tk - 128, 128)
    while vmem_cost(tb, tk, tn) > tile_budget and tn > 128:
        tn = _pick_tile(Np, tn - 128, 128)
    while vmem_cost(tb, tk, tn) > tile_budget and tb > 8:
        tb = _pick_tile(Bp, tb - 8, 8)

    nb, nn, nk = Bp // tb, Np // tn, Kp // tk

    if nk == 1:
        out = pl.pallas_call(
            functools.partial(_smd_direct_kernel, compute_dtype=compute_dtype),
            out_shape=jax.ShapeDtypeStruct((T, Bp, Np), out_dtype),
            grid=(T, nb, nn),
            in_specs=[
                pl.BlockSpec((1, tb, Kp), lambda t, b, n: (t, b, 0)),
                pl.BlockSpec((1, Kp, tn), lambda t, b, n: (t, 0, n)),
                pl.BlockSpec((1, 1, tn), lambda t, b, n: (t, 0, n)),
            ],
            out_specs=pl.BlockSpec((1, tb, tn), lambda t, b, n: (t, b, n)),
            compiler_params=pltpu.CompilerParams(
                dimension_semantics=("parallel", "parallel", "parallel"),
                vmem_limit_bytes=vmem_limit,
            ),
        )(x_p, w_p, b_p)
    else:
        out = pl.pallas_call(
            functools.partial(_smd_acc_kernel, compute_dtype=compute_dtype),
            out_shape=jax.ShapeDtypeStruct((T, Bp, Np), out_dtype),
            grid=(T, nb, nn, nk),  # K (reduction) last, marked "arbitrary"
            in_specs=[
                pl.BlockSpec((1, tb, tk), lambda t, b, n, k: (t, b, k)),
                pl.BlockSpec((1, tk, tn), lambda t, b, n, k: (t, k, n)),
                pl.BlockSpec((1, 1, tn), lambda t, b, n, k: (t, 0, n)),
            ],
            out_specs=pl.BlockSpec((1, tb, tn), lambda t, b, n, k: (t, b, n)),
            scratch_shapes=[pltpu.VMEM((tb, tn), jnp.float32)],
            compiler_params=pltpu.CompilerParams(
                dimension_semantics=("parallel", "parallel", "parallel", "arbitrary"),
                vmem_limit_bytes=vmem_limit,
            ),
        )(x_p, w_p, b_p)

    if (Bp, Np) != (B, N):
        out = out[:, :B, :N]
    return out


def sparse_multi_dense_list(inputs, weight, bias, **kwargs):
    """API-parity wrapper: list of T arrays [B, K] -> list of T arrays [B, N]."""
    out = sparse_multi_dense(jnp.stack(inputs, axis=0), weight, bias, **kwargs)
    return list(out)


if __name__ == "__main__":
    key = jax.random.PRNGKey(0)
    k_w, k_b, k_x, k_m = jax.random.split(key, 4)

    # Small shapes: T tasks, batch B, in-features K, out-features N.
    T, B, K, N = 3, 8, 32, 32

    weight = jax.random.normal(k_w, (T, K, N), dtype=jnp.float32)
    # Mimic sparsity: deterministically zero ~50% of the weights.
    mask = (jax.random.uniform(k_m, (T, K, N)) > 0.5).astype(jnp.float32)
    weight = weight * mask
    bias = jax.random.normal(k_b, (T, N), dtype=jnp.float32)
    x_stacked = jax.random.normal(k_x, (T, B, K), dtype=jnp.float32)

    out = jax.block_until_ready(sparse_multi_dense(x_stacked, weight, bias))
    assert out.shape == (T, B, N)

    # Reference with matching bf16-on-MXU precision (f32 accumulate, f32 bias).
    ref_bf16 = jnp.einsum(
        'tbk,tkn->tbn',
        x_stacked.astype(jnp.bfloat16), weight.astype(jnp.bfloat16),
        preferred_element_type=jnp.float32) + bias[:, None, :]
    assert jnp.allclose(out, ref_bf16.astype(out.dtype), atol=1e-3, rtol=1e-3)

    # Sanity check vs. exact f32 torch-module semantics (loose tol for bf16 MXU path).
    ref_f32 = jnp.einsum('tbk,tkn->tbn', x_stacked, weight) + bias[:, None, :]
    assert jnp.allclose(out, ref_f32, atol=3e-1, rtol=3e-2)

    # Exercise the multi-K-step accumulator path on a second small problem.
    T2, B2, K2, N2 = 2, 16, 256, 128
    w2 = jax.random.normal(jax.random.PRNGKey(1), (T2, K2, N2), dtype=jnp.float32)
    b2 = jax.random.normal(jax.random.PRNGKey(2), (T2, N2), dtype=jnp.float32)
    x2 = jax.random.normal(jax.random.PRNGKey(3), (T2, B2, K2), dtype=jnp.float32)
    out2 = jax.block_until_ready(sparse_multi_dense(x2, w2, b2, max_tk=128))
    ref2 = jnp.einsum('tbk,tkn->tbn',
                      x2.astype(jnp.bfloat16), w2.astype(jnp.bfloat16),
                      preferred_element_type=jnp.float32) + b2[:, None, :]
    assert jnp.allclose(out2, ref2.astype(out2.dtype), atol=5e-3, rtol=5e-3)

    # List-API wrapper parity check (matches the torch module's list-in/list-out).
    outs_list = sparse_multi_dense_list([x_stacked[i] for i in range(T)], weight, bias)
    assert len(outs_list) == T and outs_list[0].shape == (B, N)
    for i in range(T):
        assert jnp.allclose(outs_list[i], out[i], atol=1e-6, rtol=1e-6)

    print("KERNEL_OK")
</pallas_src>

<mosaic_0001>
module attributes {stable_mosaic.version = 11 : i64} {
  func.func @_smd_direct_kernel(%arg0: i32, %arg1: i32, %arg2: i32, %arg3: memref<1x8x128xf32, #tpu.memory_space<vmem>>, %arg4: memref<1x128x128xf32, #tpu.memory_space<vmem>>, %arg5: memref<1x1x128xf32, #tpu.memory_space<vmem>>, %arg6: memref<1x8x128xf32, #tpu.memory_space<vmem>>) attributes {dimension_semantics = [#tpu.dimension_semantics<parallel>, #tpu.dimension_semantics<parallel>, #tpu.dimension_semantics<parallel>], iteration_bounds = array<i64: 3, 1, 1>, scalar_prefetch = 0 : i64, scratch_operands = 0 : i64, tpu.core_type = #tpu.core_type<tc>, window_params = [{transform_indices = @transform_0, window_bounds = array<i64: 1, 8, 128>}, {transform_indices = @transform_1, window_bounds = array<i64: 1, 128, 128>}, {transform_indices = @transform_2, window_bounds = array<i64: 1, 1, 128>}, {transform_indices = @transform_3, window_bounds = array<i64: 1, 8, 128>}]} {
    %c0 = arith.constant 0 : index
    %c0_0 = arith.constant 0 : index
    %c0_1 = arith.constant 0 : index
    %0 = vector.load %arg3[%c0, %c0_0, %c0_1] : memref<1x8x128xf32, #tpu.memory_space<vmem>>, vector<1x8x128xf32>
    %1 = vector.shape_cast %0 : vector<1x8x128xf32> to vector<8x128xf32>
    %2 = arith.truncf %1 : vector<8x128xf32> to vector<8x128xbf16>
    %c0_2 = arith.constant 0 : index
    %c0_3 = arith.constant 0 : index
    %c0_4 = arith.constant 0 : index
    %3 = vector.load %arg4[%c0_2, %c0_3, %c0_4] : memref<1x128x128xf32, #tpu.memory_space<vmem>>, vector<1x128x128xf32>
    %4 = vector.shape_cast %3 : vector<1x128x128xf32> to vector<128x128xf32>
    %5 = arith.truncf %4 : vector<128x128xf32> to vector<128x128xbf16>
    %cst = arith.constant dense<0.000000e+00> : vector<8x128xf32>
    %6 = tpu.matmul %2, %5, %cst {dimension_numbers = #tpu.dot_dimension_numbers<[1], [0], [0], [1], [0, 0, 1, 1], [], []>} : vector<8x128xbf16>, vector<128x128xbf16>, vector<8x128xf32> -> vector<8x128xf32>
    %c0_5 = arith.constant 0 : index
    %c0_6 = arith.constant 0 : index
    %c0_7 = arith.constant 0 : index
    %7 = vector.load %arg5[%c0_5, %c0_6, %c0_7] : memref<1x1x128xf32, #tpu.memory_space<vmem>>, vector<1x1x128xf32>
    %8 = vector.shape_cast %7 : vector<1x1x128xf32> to vector<1x128xf32>
    %9 = vector.broadcast %8 : vector<1x128xf32> to vector<8x128xf32>
    %10 = arith.addf %6, %9 : vector<8x128xf32>
    %c0_8 = arith.constant 0 : index
    %c0_9 = arith.constant 0 : index
    %c0_10 = arith.constant 0 : index
    %11 = vector.load %arg6[%c0_8, %c0_9, %c0_10] : memref<1x8x128xf32, #tpu.memory_space<vmem>>, vector<1x8x128xf32>
    %12 = vector.shape_cast %11 : vector<1x8x128xf32> to vector<8x128xf32>
    %13 = vector.shape_cast %10 : vector<8x128xf32> to vector<1x8x128xf32>
    tpu.vector_store %arg6[%c0_8, %c0_9, %c0_10], %13 {strides = array<i32>} : memref<1x8x128xf32, #tpu.memory_space<vmem>>, vector<1x8x128xf32>,
    return
  }
  func.func @transform_0(%arg0: i32, %arg1: i32, %arg2: i32) -> (i32, i32, i32) {
    %c0_i32 = arith.constant 0 : i32
    %c0_i32_0 = arith.constant 0 : i32
    return %arg0, %arg1, %c0_i32 : i32, i32, i32
  }
  func.func @transform_1(%arg0: i32, %arg1: i32, %arg2: i32) -> (i32, i32, i32) {
    %c0_i32 = arith.constant 0 : i32
    %c0_i32_0 = arith.constant 0 : i32
    return %arg0, %c0_i32, %arg2 : i32, i32, i32
  }
  func.func @transform_2(%arg0: i32, %arg1: i32, %arg2: i32) -> (i32, i32, i32) {
    %c0_i32 = arith.constant 0 : i32
    %c0_i32_0 = arith.constant 0 : i32
    return %arg0, %c0_i32, %arg2 : i32, i32, i32
  }
  func.func @transform_3(%arg0: i32, %arg1: i32, %arg2: i32) -> (i32, i32, i32) {
    %c0_i32 = arith.constant 0 : i32
    return %arg0, %arg1, %arg2 : i32, i32, i32
  }
}

</mosaic_0001>

<bundles_post_ra>
// kernel: tpu_custom_call.1
= control target key start
LH: loop header
LB: loop body
LE: loop exit
PB: predicated region body
PF: predicated region fallthrough
CT: control target
= control target key end

     0   :  { %s962_s0 = inlined_call_operand.hbm [shape: f32[3,8,128], index: 0, kind: input, shape index: {}]   ;;  %s963_s1 = inlined_call_operand.hbm [shape: f32[3,128,128], index: 1, kind: input, shape index: {}]   ;;  %s964_s2 = inlined_call_operand.hbm [shape: f32[3,1,128], index: 2, kind: input, shape index: {}]   ;;  %s965_s3 = inlined_call_operand.hbm [shape: f32[3,8,128], index: 3, kind: output, shape index: {}]  }
   0x1   :  { %968 = sst [smem:[#allocation15_spill]] %s963_s1 }
   0x2   :  { %8 = vsyncpa [#allocation3], 0 }
   0x3   :  { %10 = vsyncpa [#allocation3 + $0x1], 0 }
   0x4   :  { %11 = vsyncpa [#allocation6], 0 }
   0x5   :  { %13 = vsyncpa [#allocation6 + $0x1], 0 }
   0x6   :  { %14 = vsyncpa [#allocation4], 0 }
   0x7   :  { %16 = vsyncpa [#allocation4 + $0x1], 0  ;;  %s775_s12 = smov 0   ;;  %s777_s13 = smov 0  }
   0x8   :  { %s779_s14 = smov 0   ;;  %s781_s15 = smov 0  }
   0x9   :  { %s783_s16 = smov 0   ;;  %s785_s17 = smov 0  }
   0xa LB: > { %969 = sst [smem:[#allocation12_spill]] %s739_s14  ;;  %s806_s18 = sadd.s32 4294967295, %s751_s17   ;;  %s751_s17 = sphi %s785_s17, %s22_s17   ;;  %s747_s16 = sphi %s783_s16, %s986_s16   ;;  %s743_s15 = sphi %s781_s15, %s985_s15   ;;  %s739_s14 = sphi %s779_s14, %s984_s14   ;;  %s735_s13 = sphi %s777_s13, %s983_s13   ;;  %s731_s12 = sphi %s775_s12, %s982_s12  }
   0xb   : > { %s483_s19 = sadd.s32 4294967294, %s751_s17   ;;  %s41_s20 = sadd.s32 1, %s747_s16 }
   0xc   : > { %s50_s21 = sadd.s32 1, %s739_s14  ;;  %p43_p0 = scmp.ge.s32.totalorder %s41_s20, 3 }
   0xd   : > { %p57_p1 = scmp.ne.s32.totalorder %s739_s14, %s735_s13  ;;  %p58_p2 = scmp.eq.s32.totalorder %s751_s17, 0 }
   0xe   : > { %p63_p3 = scmp.ne.s32.totalorder %s735_s13, %s731_s12  ;;  %s988_s20 = smov (%p43_p0, %s41_s20), 0 }
   0xf   : > { %970 = sst [smem:[#allocation13_spill]] %s988_s20  ;;  %p818_p4 = por %p58_p2, %p57_p1 }
  0x10   : > { %p64_p5 = scmp.eq.s32.totalorder %s806_s18, 0  ;;  %s45_s23 = ssub.s32 %s747_s16, %s988_s20 }
  0x11   : > { %p147_p6 = scmp.eq.s32.totalorder %s806_s18, 2  ;;  %p48_p7 = scmp.eq.s32.totalorder %s45_s23, 0 }
  0x12   : > { %p826_p8 = por %p64_p5, %p63_p3  ;;  %p153_p10 = scmp.eq.s32.totalorder %s483_s19, 2 }
  0x13   : > { %p830_p9 = por %p147_p6, %p57_p1  ;;  %p522_p12 = scmp.lt.s32.totalorder %s751_s17, 3 }
  0x14   : > { %s835_s26 = scalar_select %p48_p7, %s739_s14, %s50_s21  }
  0x15   : > { %p837_p11 = por %p153_p10, %p63_p3  ;;  %s843_s28 = sand.u32 1, %s739_s14  }
  0x16   : > { %974 = sst [smem:[#allocation14_spill]] %s835_s26  ;;  %s193_s29 = sand.u32 1, %s751_s17  }
  0x17   : > { %s488_s30 = sshll.u32 %s843_s28, 7  ;;  %p849_p13 = pnand %p522_p12, %p818_p4 }
  0x18   : > { %s499_s5 = sshll.u32 %s747_s16, 7  ;;  %s977_s1 = sld [smem:[#allocation15_spill]] }
  0x19   : > { %s197_s10 = scalar_lea.vmem [#allocation5], %s488_s30  ;;  %s194_s19 = scalar_lea.sflag [#allocation6], %s193_s29 }
  0x1a   : > { %s206_s11 = sshll.u32 %s197_s10, 4  ;;  %s753_s21 = smov 128   ;;  %s207_s11 = int_to_ptr.vmem [resolvable:$true] %s206_s11 }
  0x1b   : > { %s754_s22 = smov 8   ;;  %p491_p0 = scmp.ge.s32.totalorder %s751_s17, 1 }
  0x1c   : > { %p232_p1 = scmp.lt.s32.totalorder %s751_s17, 4  ;;  %s487_s30 = sshll.u32 %s747_s16, 3 }
  0x1d   : > { %s182_s29 = scalar_lea.hbm %s962_s0, %s487_s30  ;;  %s219_s26 = scalar_lea.vmem [#allocation7], %s843_s28 }
  0x1e   : > { %s203_s8 = scalar_lea.hbm %s977_s1, %s499_s5  ;;  %p861_p2 = pnand %p491_p0, %p232_p1 }
  0x1f   : > { %s204_s9 = sshll.u32 %s203_s8, 4  ;;  %s486_s5 = sshll.u32 %s843_s28, 3  ;;  %s205_s9 = int_to_ptr.hbm [resolvable:$true] %s204_s9 }
  0x20   : > { %514 = dma.hbm_to_vmem [thread:$0]  (!%p849_p13), %s205_s9, 2048, %s207_s11, %s194_s19, %s753_s21, %s753_s21, %s754_s22  }
  0x21   : > { %s184_s8 = sshll.u32 %s182_s29, 4  ;;  %s177_s10 = scalar_lea.vmem [#allocation2], %s486_s5  ;;  %s185_s8 = int_to_ptr.hbm [resolvable:$true] %s184_s8 }
  0x22   : > { %s186_s1 = sshll.u32 %s177_s10, 4  ;;  %s174_s9 = scalar_lea.sflag [#allocation3], %s843_s28  ;;  %s187_s1 = int_to_ptr.vmem [resolvable:$true] %s186_s1 }
  0x23   : > { %511 = dma.hbm_to_vmem [thread:$0]  (!%p849_p13), %s185_s8, 128, %s187_s1, %s174_s9  }
  0x24   : > { %s223_s22 = scalar_lea.hbm %s964_s2, %s747_s16  ;;  %s227_s14 = sshll.u32 %s219_s26, 4  ;;  %s228_s14 = int_to_ptr.vmem [resolvable:$true] %s227_s14 }
  0x25   : > { %s225_s20 = sshll.u32 %s223_s22, 4  ;;  %236 = sbr.rel (%p861_p2) target bundleno = 214 (0xd6), region = 32  ;;  %s226_s20 = int_to_ptr.hbm [resolvable:$true] %s225_s20 }
  0x26   : > { %517 = dma.hbm_to_vmem [thread:$0]  (!%p849_p13), %s226_s20, 16, %s228_s14, %s194_s19  }
  0x27   : > { %s883_s5 = sand.u32 (!%p861_p2), 1, %s735_s13  }
  0x28   : > { %s492_s1 = sshll.u32 (!%p861_p2), %s883_s5, 3  ;;  %s239_s30 = scalar_lea.sflag (!%p861_p2), [#allocation3], %s883_s5 }
  0x29   : > { %s889_s6 = scalar_lea.vmem (!%p861_p2), [#allocation2], %s492_s1 }
  0x2a   : > { %718 = dma.done.wait (%p826_p8), %s239_s30, 128  }
  0x2b   : > { %720 = vsyncadd (%p826_p8), %s239_s30, 4294967168  ;;  %s248_s14 = sand.u32 1, %s806_s18   ;;  %s493_s20 = sshll.u32 %s883_s5, 7 }
  0x2c   : > { %s249_s26 = scalar_lea.sflag [#allocation6], %s248_s14  ;;  %s897_s28 = scalar_lea.vmem [#allocation5], %s493_s20 }
  0x2d   : > { %722 = dma.done.wait (%p826_p8), %s249_s26, 2064  }
  0x2e   : > { %724 = vsyncadd (%p826_p8), %s249_s26, 4294965232  ;;  %v310_v0 = vld [vmem:[%s897_s28 + $0x70] sm:$0xff]  ;;  %v311_v1 = vld [vmem:[%s897_s28 + $0x78] sm:$0xff]  ;;  %s261_s18 = scalar_lea.vmem [#allocation7], %s883_s5  ;;  %s496_s24 = sshll.u32 %s743_s15, 3 }
  0x2f   : > { %v308_v2 = vld [vmem:[%s897_s28 + $0x60] sm:$0xff]  ;;  %v319_v3 = vpack.c.bf16 %v311_v1, %v310_v0  ;;  %v309_v4 = vld [vmem:[%s897_s28 + $0x68] sm:$0xff]  ;;  %v306_v6 = vld [vmem:[%s897_s28 + $0x50] sm:$0xff]  ;;  %s351_s23 = scalar_lea.hbm %s965_s3, %s496_s24  ;;  %s293_s7 = scalar_lea.vmem [#allocation8], %s492_s1 }
  0x30   : > { %v318_v5 = vpack.c.bf16 %v309_v4, %v308_v2  ;;  %v307_v7 = vld [vmem:[%s897_s28 + $0x58] sm:$0xff]  ;;  %v304_v9 = vld [vmem:[%s897_s28 + $0x40] sm:$0xff]  ;;  %v305_v10 = vld [vmem:[%s897_s28 + $0x48] sm:$0xff]  ;;  %s353_s29 = sshll.u32 %s293_s7, 4  ;;  %s355_s8 = sshll.u32 %s351_s23, 4  ;;  %s354_s29 = int_to_ptr.vmem [resolvable:$true] %s353_s29  ;;  %s356_s8 = int_to_ptr.hbm [resolvable:$true] %s355_s8 }
  0x31   : > { %324 = vmatpush.bf16.msra.mxu0 %v319_v3  ;;  %v317_v8 = vpack.c.bf16 %v307_v7, %v306_v6  ;;  %v316_v11 = vpack.c.bf16 %v305_v10, %v304_v9  ;;  %v302_v12 = vld [vmem:[%s897_s28 + $0x30] sm:$0xff]  ;;  %v303_v13 = vld [vmem:[%s897_s28 + $0x38] sm:$0xff]  ;;  %v300_v15 = vld [vmem:[%s897_s28 + $0x20] sm:$0xff]  ;;  %s339_s10 = scalar_lea.sflag [#allocation4], %s883_s5  ;;  %s679_s9 = sshra.s32 %s356_s8, 4  ;;  %s680_s9 = int_to_ptr.hbm [resolvable:$true] %s679_s9 }
  0x32   : > { %v315_v14 = vpack.c.bf16 %v303_v13, %v302_v12  ;;  %v301_v16 = vld [vmem:[%s897_s28 + $0x28] sm:$0xff]  ;;  %v298_v18 = vld [vmem:[%s897_s28 + $0x10] sm:$0xff]  ;;  %v299_v19 = vld [vmem:[%s897_s28 + $0x18] sm:$0xff]  ;;  %s681_s15 = scalar_lea.hbm %s680_s9, 8  ;;  %s685_s22 = scalar_lea.hbm %s965_s3, 24 }
  0x33   : > { %v314_v17 = vpack.c.bf16 %v301_v16, %v300_v15  ;;  %v313_v20 = vpack.c.bf16 %v299_v19, %v298_v18  ;;  %v296_v21 = vld [vmem:[%s897_s28] sm:$0xff]  ;;  %v297_v22 = vld [vmem:[%s897_s28 + $0x8] sm:$0xff]  ;;  %v294_v24 = vld [vmem:[%s889_s6] sm:$0xff]  ;;  %p682_p3 = scmp.ne.s32.totalorder %s680_s9, %s681_s15  ;;  %p686_p6 = scmp.lt.s32.totalorder %s680_s9, %s965_s3 }
  0x34   : > { %v312_v23 = vpack.c.bf16 %v297_v22, %v296_v21  ;;  %v295_v25 = vpack.c.bf16 %v294_v24, %v294_v24  ;;  %v574_v26 = vld [vmem:[%s261_s18] ss:$0 sm:$0xff]  ;;  %p687_p7 = scmp.lt.s32.totalorder %s685_s22, %s681_s15 }
  0x35   : > { %325 = vmatpush.bf16.msra.mxu0 %v318_v5  ;;  %p683_p4 = pnand %p682_p3, %p830_p9 }
  0x36   : > { %p688_p8 = por %p687_p7, %p686_p6 }
  0x37   : > { %p684_p5 = pneg %p683_p4 }
  0x39   : > { %326 = vmatpush.bf16.msra.mxu0 %v317_v8  ;;  %p689_p10 = pnand %p688_p8, %p684_p5 }
  0x3d   : > { %327 = vmatpush.bf16.msra.mxu0 %v316_v11 }
  0x41   : > { %328 = vmatpush.bf16.msra.mxu0 %v315_v14 }
  0x45   : > { %329 = vmatpush.bf16.msra.mxu0 %v314_v17 }
  0x49   : > { %330 = vmatpush.bf16.msra.mxu0 %v313_v20 }
  0x4d   : > { %331 = vmatpush.bf16.msra.mxu0 %v312_v23 }
  0x50   : > { %332 = vmatmul.bf16.vlgmr.msra.gmra.mxu0 %v295_v25 }
  0xcd   : > { %v333_v27 = vpop.f32.mrf.mxu0 }
  0xce   : > { %v334_v28 = vadd.f32 %v574_v26, %v333_v27 }
  0xd0   : > { %337 = vst [vmem:[%s293_s7] sm:$0xff] %v334_v28 }
  0xd1   : > { %692 = shalt.err (!%p689_p10)
}
  0xd2   : > { %506 = dma.vmem_to_hbm [thread:$0]  (%p830_p9), %s354_s29, 128, %s356_s8, %s339_s10  }
  0xd5   : > { %v335_v29 = vpop.f32.mrf.mxu0 }
  0xd6 PF: > { %p523_p12 = scmp.ge.s32.totalorder %s751_s17, 2  ;;  %s367_s5 = sand.u32 1, %s731_s12  }
  0xd7   : > { %s368_s6 = scalar_lea.sflag [#allocation4], %s367_s5 }
  0xd8   : > { %p519_p13 = pnand %p523_p12, %p837_p11 }
  0xda   : > { %p520_p0 = pneg %p519_p13 }
  0xdc   : > { %726 = dma.done.wait (%p520_p0), %s368_s6, 128  }
  0xdd   : > { %728 = vsyncadd (%p520_p0), %s368_s6, 4294967168  ;;  %s22_s17 = sadd.s32 1, %s751_s17   ;;  %s979_s14 = sld [smem:[#allocation12_spill]] }
  0xde   : > { %p19_p1 = scmp.ge.s32.totalorder %s22_s17, 5   ;;  %s980_s25 = sld [smem:[#allocation14_spill]] }
  0xdf   : > { %s981_s20 = sld [smem:[#allocation13_spill]]  ;;  %s982_s12 = smov %s735_s13 }
  0xe0   : > { %s985_s15 = smov %s747_s16 }
  0xe1   :  { %21 = sbr.rel (!%p19_p1) target bundleno = 10 (0xa), region = 101 }
  0xe3   : > { %s983_s13 = smov %s979_s14 }
  0xe4   : > { %s984_s14 = smov %s980_s25 }
  0xe5   : > { %s986_s16 = smov %s981_s20 }
  0xe6   :  { %374 = vsyncpa [#allocation3], 1 }
  0xe7   :  { %376 = vsyncpa [#allocation3 + $0x1], 1 }
  0xe8   :  { %377 = vsyncpa [#allocation6], 1 }
  0xe9   :  { %379 = vsyncpa [#allocation6 + $0x1], 1 }
  0xea   :  { %380 = vsyncpa [#allocation4], 1 }
  0xeb   :  { %382 = vsyncpa [#allocation4 + $0x1], 1 }

</bundles_post_ra>
